<compile_context>
chip_gen: v7x
topology: tpu7x:2x2x1
jax: 0.10.0
libtpu: 0.0.40
codegen_flags: <defaults>
</compile_context>

<pallas_src>
import math

import jax
import jax.numpy as jnp
from jax.experimental import pallas as pl
from jax.experimental.pallas import tpu as pltpu

_LANES = 128
_SUBLANES = 8


def _round_up(x, m):
    return ((x + m - 1) // m) * m


def _target_block_bytes():
    """Byte budget per streamed block.

    ~1 MiB sits at the measured ~86% HBM-roofline plateau on v6e and keeps
    in+out double-buffered blocks far under v5e's 16 MiB scoped-VMEM default.
    On v7x (3.2 TB/s HBM) the ~0.35 us per-grid-step overhead becomes visible
    at 1 MiB, so use 4 MiB blocks there (still well inside the 32 MiB default).
    """
    try:
        if jax.default_backend() == "tpu":
            kind = (getattr(jax.devices()[0], "device_kind", "") or "").lower()
            if "7" in kind:
                return 4 << 20
    except Exception:
        pass
    return 1 << 20


def _choose_tiles(batch, feat, itemsize, target_bytes):
    """Pick (tb, tf) block dims: tf a multiple of 128, tb == batch or a multiple of 8."""
    feat_cap = _round_up(max(feat, 1), _LANES)
    if batch * _LANES * itemsize <= target_bytes:
        tb = batch                                  # whole batch per block (common case)
    else:
        tb = max(_SUBLANES,
                 (target_bytes // (_LANES * itemsize)) // _SUBLANES * _SUBLANES)
        tb = min(tb, _round_up(batch, _SUBLANES))
    tf = (target_bytes // (tb * itemsize)) // _LANES * _LANES
    tf = max(_LANES, min(tf, feat_cap))
    return tb, tf


# ---------------------------------------------------------------------------
# Kernel: lane-dense per-sample broadcast multiply (the HBM-bound part)
# ---------------------------------------------------------------------------
def _drop_path_kernel(x_ref, m_ref, o_ref):
    # x_ref: (tb, tf) feature block; m_ref: (tb, 1) per-sample scale in x's dtype.
    # Broadcast along lanes; math stays in the native dtype (bf16 VALU on v6e/v7x).
    o_ref[...] = (x_ref[...] * m_ref[...]).astype(o_ref.dtype)


def _apply_mask(x, mask):
    """out[i] = x[i] * mask[i], with x viewed as a flat (batch, feat) 2-D array."""
    b = x.shape[0]
    feat = math.prod(x.shape[1:])
    x2 = x.reshape(b, feat)
    m2 = mask.reshape(b, 1).astype(x.dtype)

    tb, tf = _choose_tiles(b, feat, x.dtype.itemsize, _target_block_bytes())
    grid = (pl.cdiv(b, tb), pl.cdiv(feat, tf))      # ragged edges masked by Pallas

    extra = {}
    if jax.default_backend() == "tpu":
        extra["compiler_params"] = pltpu.CompilerParams(
            dimension_semantics=("parallel", "parallel"))

    out2 = pl.pallas_call(
        _drop_path_kernel,
        out_shape=jax.ShapeDtypeStruct((b, feat), x.dtype),
        grid=grid,
        in_specs=[
            pl.BlockSpec((tb, tf), lambda i, j: (i, j)),
            pl.BlockSpec((tb, 1), lambda i, j: (i, 0)),
        ],
        out_specs=pl.BlockSpec((tb, tf), lambda i, j: (i, j)),
        **extra,
    )(x2, m2)
    return out2.reshape(x.shape)


# ---------------------------------------------------------------------------
# Public API mirroring the PyTorch module
# ---------------------------------------------------------------------------
def _keep_mask(batch, keep_prob, scale_by_keep, key, dtype):
    """(batch,) array: 0 for dropped samples, keep_scale for kept ones (in `dtype`)."""
    keep = jax.random.bernoulli(key, p=keep_prob, shape=(batch,))
    scale = (1.0 / keep_prob) if (scale_by_keep and keep_prob > 0.0) else 1.0
    return jnp.where(keep, jnp.asarray(scale, dtype), jnp.asarray(0.0, dtype))


def drop_path(x, drop_prob=0.0, training=False, scale_by_keep=True, *,
              key=None, rng_seed=0):
    if drop_prob == 0.0 or not training:
        return x
    if key is None:
        key = jax.random.PRNGKey(rng_seed)
    keep_prob = 1.0 - drop_prob
    mask = _keep_mask(x.shape[0], keep_prob, scale_by_keep, key, x.dtype)
    return _apply_mask(x, mask)


class DropPath:
    """Drop paths (Stochastic Depth) per sample."""

    def __init__(self, drop_prob=0.0, scale_by_keep=True):
        self.drop_prob = drop_prob
        self.scale_by_keep = scale_by_keep
        self.training = True

    def __call__(self, x, *, key=None, rng_seed=0):
        return drop_path(x, self.drop_prob, self.training, self.scale_by_keep,
                         key=key, rng_seed=rng_seed)


if __name__ == "__main__":
    key0 = jax.random.PRNGKey(0)
    b, c, h, w = 2, 4, 16, 16
    x = jax.random.normal(key0, (b, c, h, w), dtype=jnp.float32)

    drop_prob = 0.25
    keep_prob = 1.0 - drop_prob

    # --- training mode: per-sample stochastic depth ---
    layer = DropPath(drop_prob=drop_prob, scale_by_keep=True)
    layer.training = True
    out = jax.block_until_ready(layer(x, key=jax.random.PRNGKey(1234)))
    assert out.shape == x.shape and out.dtype == x.dtype, (out.shape, out.dtype)

    # each sample must be either exactly zero or exactly x[i] / keep_prob
    for i in range(b):
        err_keep = float(jnp.max(jnp.abs(out[i] * keep_prob - x[i])))
        err_drop = float(jnp.max(jnp.abs(out[i])))
        assert min(err_keep, err_drop) < 1e-5, (i, err_keep, err_drop)

    # --- feature size not a multiple of 128 exercises the masked ragged path ---
    x2 = jax.random.normal(jax.random.PRNGKey(1), (3, 5, 7, 9), dtype=jnp.float32)
    out2 = jax.block_until_ready(
        drop_path(x2, drop_prob=drop_prob, training=True,
                  key=jax.random.PRNGKey(7)))
    for i in range(x2.shape[0]):
        err_keep = float(jnp.max(jnp.abs(out2[i] * keep_prob - x2[i])))
        err_drop = float(jnp.max(jnp.abs(out2[i])))
        assert min(err_keep, err_drop) < 1e-5, (i, err_keep, err_drop)

    # --- scale_by_keep=False: kept samples are passed through unscaled ---
    out3 = jax.block_until_ready(
        drop_path(x, drop_prob=drop_prob, training=True, scale_by_keep=False,
                  key=jax.random.PRNGKey(5)))
    for i in range(b):
        err_keep = float(jnp.max(jnp.abs(out3[i] - x[i])))
        err_drop = float(jnp.max(jnp.abs(out3[i])))
        assert min(err_keep, err_drop) < 1e-6, (i, err_keep, err_drop)

    # --- bf16 path stays in native dtype (looser tolerance for bf16 rounding) ---
    xb = jax.random.normal(jax.random.PRNGKey(2), (4, 8, 32), dtype=jnp.bfloat16)
    outb = jax.block_until_ready(
        drop_path(xb, drop_prob=drop_prob, training=True,
                  key=jax.random.PRNGKey(11)))
    assert outb.dtype == jnp.bfloat16
    xb32, ob32 = xb.astype(jnp.float32), outb.astype(jnp.float32)
    for i in range(xb.shape[0]):
        err_keep = float(jnp.max(jnp.abs(ob32[i] * keep_prob - xb32[i])))
        err_drop = float(jnp.max(jnp.abs(ob32[i])))
        assert min(err_keep, err_drop) < 5e-2, (i, err_keep, err_drop)

    # --- eval mode / drop_prob == 0.0: identity (no kernel launch) ---
    assert drop_path(x, drop_prob=drop_prob, training=False) is x
    assert drop_path(x, drop_prob=0.0, training=True) is x

    print("KERNEL_OK")
</pallas_src>

<mosaic_0001>
module attributes {stable_mosaic.version = 11 : i64} {
  func.func @_drop_path_kernel(%arg0: i32, %arg1: i32, %arg2: memref<2x1024xf32, #tpu.memory_space<vmem>>, %arg3: memref<2x1xf32, #tpu.memory_space<vmem>>, %arg4: memref<2x1024xf32, #tpu.memory_space<vmem>>) attributes {dimension_semantics = [#tpu.dimension_semantics<arbitrary>, #tpu.dimension_semantics<arbitrary>], iteration_bounds = array<i64: 1, 1>, scalar_prefetch = 0 : i64, scratch_operands = 0 : i64, tpu.core_type = #tpu.core_type<tc>, window_params = [{transform_indices = @transform_0, window_bounds = array<i64: 2, 1024>}, {transform_indices = @transform_1, window_bounds = array<i64: 2, 1>}, {transform_indices = @transform_2, window_bounds = array<i64: 2, 1024>}]} {
    %c0 = arith.constant 0 : index
    %c0_0 = arith.constant 0 : index
    %0 = vector.load %arg2[%c0, %c0_0] : memref<2x1024xf32, #tpu.memory_space<vmem>>, vector<2x1024xf32>
    %c0_1 = arith.constant 0 : index
    %c0_2 = arith.constant 0 : index
    %1 = vector.load %arg3[%c0_1, %c0_2] : memref<2x1xf32, #tpu.memory_space<vmem>>, vector<2x1xf32>
    %2 = vector.broadcast %1 : vector<2x1xf32> to vector<2x1024xf32>
    %3 = arith.mulf %0, %2 : vector<2x1024xf32>
    %c0_3 = arith.constant 0 : index
    %c0_4 = arith.constant 0 : index
    %4 = vector.load %arg4[%c0_3, %c0_4] : memref<2x1024xf32, #tpu.memory_space<vmem>>, vector<2x1024xf32>
    tpu.vector_store %arg4[%c0_3, %c0_4], %3 {strides = array<i32>} : memref<2x1024xf32, #tpu.memory_space<vmem>>, vector<2x1024xf32>,
    return
  }
  func.func @transform_0(%arg0: i32, %arg1: i32) -> (i32, i32) {
    %c0_i32 = arith.constant 0 : i32
    return %arg0, %arg1 : i32, i32
  }
  func.func @transform_1(%arg0: i32, %arg1: i32) -> (i32, i32) {
    %c0_i32 = arith.constant 0 : i32
    %c0_i32_0 = arith.constant 0 : i32
    return %arg0, %c0_i32 : i32, i32
  }
  func.func @transform_2(%arg0: i32, %arg1: i32) -> (i32, i32) {
    %c0_i32 = arith.constant 0 : i32
    return %arg0, %arg1 : i32, i32
  }
}

</mosaic_0001>

<bundles_post_ra>
// kernel: tpu_custom_call.1
= control target key start
LH: loop header
LB: loop body
LE: loop exit
PB: predicated region body
PF: predicated region fallthrough
CT: control target
= control target key end

     0   :  { %7 = vsyncpa [#allocation3], 0  ;;  %s157_s0 = inlined_call_operand.hbm [shape: f32[2,1024], index: 0, kind: input, shape index: {}]   ;;  %s158_s1 = inlined_call_operand.vmem [shape: f32[2,1], index: 1, kind: input, shape index: {}]   ;;  %s159_s2 = inlined_call_operand.hbm [shape: f32[2,1024], index: 2, kind: output, shape index: {}]  }
   0x1   :  { %8 = vsyncpa [#allocation4], 0  ;;  %s111_s9 = smov [#allocation2]   ;;  %s63_s13 = scalar_lea.hbm %s157_s0, 256 }
   0x2   :  { %s15_s10 = sshll.u32 %s111_s9, 4  ;;  %p64_p0 = scmp.ne.s32.totalorder %s157_s0, %s63_s13  ;;  %s16_s10 = int_to_ptr.vmem [resolvable:$true] %s15_s10 }
   0x3   :  { %p67_p1 = scmp.lt.u32.totalorder %s63_s13, %s157_s0 }
   0x5   :  { %p69_p2 = pnand %p67_p1, %p64_p0 }
   0x7   :  { %72 = shalt.err (!%p69_p2)
}
   0x8   :  { %s73_s18 = scalar_lea.vmem %s16_s10, 256  ;;  %p78_p4 = scmp.lt.s32.totalorder %s16_s10, %s16_s10 }
   0x9   :  { %p74_p3 = scmp.ne.s32.totalorder %s16_s10, %s73_s18  ;;  %p79_p5 = scmp.lt.s32.totalorder %s73_s18, %s73_s18 }
   0xb   :  { %p80_p6 = por %p79_p5, %p78_p4 }
   0xd   :  { %p81_p7 = pnand %p80_p6, %p74_p3 }
   0xf   :  { %84 = shalt.err (!%p81_p7)
}
  0x10   :  { %18 = dma.hbm_to_vmem [thread:$0]  %s157_s0, 256, %s16_s10, [#allocation3]  }
  0x11   :  { %107 = dma.done.wait [#allocation3], 256  }
  0x12   :  { %108 = vsyncadd [#allocation3], 4294967040  ;;  %v112_v0 = vmov 0   ;;  %v26_v1 = vld [vmem:[%s158_s1] sm:$0x3]  ;;  %v34_v4 = vlaneseq  ;;  %v25_v10 = vld [vmem:[#allocation2 + $0x8] sm:$0xff] }
  0x13   :  { %62 = vset.pattern.permute.xlu0 %v112_v0  ;;  %v113_v2 = vmov 269488144   ;;  %v24_v9 = vld [vmem:[#allocation2] sm:$0xff]  ;;  %s114_s23 = smov [#allocation5]  }
  0x14   :  { %29 = vperm.xlu0 %62, %v26_v1   ;;  %v32_v3 = vunpack.c.l.s4 %v113_v2  ;;  %v35_v6 = vshrl.u32 %v34_v4, 7  ;;  %s49_s0 = sshll.u32 %s114_s23, 4  ;;  %s50_s0 = int_to_ptr.vmem [resolvable:$true] %s49_s0 }
  0x15   :  { %s85_s24 = scalar_lea.vmem %s50_s0, 256  ;;  %p90_p9 = scmp.lt.s32.totalorder %s50_s0, %s50_s0 }
  0x16   :  { %v33_v5 = vunpack.c.0.s8 %v32_v3  ;;  %p86_p8 = scmp.ne.s32.totalorder %s50_s0, %s85_s24  ;;  %p91_p10 = scmp.lt.s32.totalorder %s85_s24, %s85_s24 }
  0x18   :  { %v36_v7 = vsub.s32 %v33_v5, %v35_v6  ;;  %p92_p11 = por %p91_p10, %p90_p9 }
  0x1a   :  { %p93_p12 = pnand %p92_p11, %p86_p8 }
  0x93   :  { %v30_v8 = vpop.permute.xlu0 %29 }
  0x94   :  { %v37_v11 = vrot.slane %v30_v8, %v36_v7 }
  0x96   :  { %v39_v12 = vmul.f32 %v37_v11, %v24_v9  ;;  %v40_v13 = vmul.f32 %v37_v11, %v25_v10 }
  0x98   :  { %41 = vst [vmem:[#allocation5] sm:$0xff] %v39_v12  ;;  %42 = vst [vmem:[#allocation5 + $0x8] sm:$0xff] %v40_v13 }
  0x99   :  { %96 = shalt.err (!%p93_p12)
}
  0x9a   :  { %s97_s26 = scalar_lea.hbm %s159_s2, 256 }
  0x9b   :  { %p98_p13 = scmp.ne.s32.totalorder %s159_s2, %s97_s26  ;;  %p101_p0 = scmp.lt.u32.totalorder %s97_s26, %s159_s2 }
  0x9d   :  { %p103_p1 = pnand %p101_p0, %p98_p13 }
  0x9f   :  { %106 = shalt.err (!%p103_p1)
}
  0xa0   :  { %52 = dma.vmem_to_hbm [thread:$0]  %s50_s0, 256, %s159_s2, [#allocation4]  }
  0xa1   :  { %109 = dma.done.wait [#allocation4], 256  }
  0xa2   :  { %110 = vsyncadd [#allocation4], 4294967040 }
  0xa3   :  { %56 = vsyncpa [#allocation3], 1 }
  0xa4   :  { %57 = vsyncpa [#allocation4], 1 }

</bundles_post_ra>
